<compile_context>
chip_gen: v6e
topology: v6e:2x2x1
jax: 0.10.0
libtpu: 0.0.40
codegen_flags: <defaults>
</compile_context>

<pallas_src>
import functools

import jax
import jax.numpy as jnp
from jax.experimental import pallas as pl
from jax.experimental.pallas import tpu as pltpu


def _round_up(x, m):
    return (x + m - 1) // m * m


def _smoothed_ce_block_kernel(logits_ref, tgt_ref, out_ref, *,
                              num_classes, epsilon, batch_size, block_rows):
    """One (head, batch-tile) grid point.

    logits_ref: (TB, K_pad) input dtype (bf16/f32) in VMEM
    tgt_ref:    (TB, 1)     int32 in VMEM
    out_ref:    (8, 128)    f32 in VMEM -- lane-dense per-block partial sum
    """
    bi = pl.program_id(1)

    x = logits_ref[...].astype(jnp.float32)                       # (TB, K_pad)
    t = tgt_ref[...]                                              # (TB, 1)

    col = jax.lax.broadcasted_iota(jnp.int32, x.shape, 1)         # (TB, K_pad)
    col_valid = col < num_classes

    # Numerically stable row-wise logsumexp over the real (unpadded) classes.
    xm = jnp.where(col_valid, x, -jnp.inf)
    m = jnp.max(xm, axis=1, keepdims=True)                        # (TB, 1)
    ez = jnp.where(col_valid, jnp.exp(x - m), 0.0)
    lse = jnp.log(jnp.sum(ez, axis=1, keepdims=True))             # (TB, 1)

    # Per-row scalar reductions (no full-width log_probs / onehot temporaries).
    s = jnp.sum(jnp.where(col_valid, x, 0.0), axis=1, keepdims=True)   # sum_k x_k
    xt = jnp.sum(jnp.where(col == t, x, 0.0), axis=1, keepdims=True)   # x[target]

    k_f = jnp.float32(num_classes)
    log_p_target = xt - m - lse                       # log_softmax at the target class
    sum_log_p = s - k_f * (m + lse)                   # sum_k log_softmax_k
    row_loss = (-(1.0 - epsilon) * log_p_target
                - (epsilon / num_classes) * sum_log_p)            # (TB, 1)

    # Mask batch-padding rows (divide by the *global* batch size happens in JAX).
    row = jax.lax.broadcasted_iota(jnp.int32, row_loss.shape, 0)  # (TB, 1)
    row_valid = (bi * block_rows + row) < batch_size
    partial = jnp.sum(jnp.where(row_valid, row_loss, 0.0))

    out_ref[...] = jnp.full(out_ref.shape, partial, dtype=out_ref.dtype)


def smoothed_cross_entropy_multi(logits_stack, targets, *, epsilon=0.1,
                                 label_smooth=True,
                                 vmem_block_bytes=4 * 1024 * 1024):
    """Label-smoothed CE for a stack of prediction heads.

    logits_stack: (H, B, K) float32/bfloat16 logits (pre-softmax).
    targets:      (B,) integer class indices.
    Returns:      (H,) float32 per-head losses (mean over batch, sum over classes).
    """
    h, b, k = logits_stack.shape
    eps = float(epsilon) if label_smooth else 0.0

    # Pad the class axis to a lane multiple and tile the batch axis.
    k_pad = _round_up(k, 128)
    itemsize = jnp.dtype(logits_stack.dtype).itemsize
    rows_budget = max(8, (vmem_block_bytes // (k_pad * itemsize)) // 8 * 8)
    tb = min(_round_up(b, 8), rows_budget)
    b_pad = _round_up(b, tb)
    nb = b_pad // tb

    logits_p = jnp.pad(logits_stack, ((0, 0), (0, b_pad - b), (0, k_pad - k)))
    tgt_p = jnp.pad(targets.astype(jnp.int32), (0, b_pad - b)).reshape(b_pad, 1)

    kernel = functools.partial(_smoothed_ce_block_kernel,
                               num_classes=k, epsilon=eps,
                               batch_size=b, block_rows=tb)

    out = pl.pallas_call(
        kernel,
        out_shape=jax.ShapeDtypeStruct((h * nb * 8, 128), jnp.float32),
        grid_spec=pltpu.PrefetchScalarGridSpec(
            num_scalar_prefetch=0,
            grid=(h, nb),
            in_specs=[
                # (head, batch-tile, full padded class axis); head dim squeezed.
                pl.BlockSpec((None, tb, k_pad), lambda hi, bi: (hi, bi, 0)),
                pl.BlockSpec((tb, 1), lambda hi, bi: (bi, 0)),
            ],
            out_specs=pl.BlockSpec((8, 128), lambda hi, bi: (hi * nb + bi, 0)),
        ),
        compiler_params=pltpu.CompilerParams(
            dimension_semantics=("parallel", "parallel")),
    )(logits_p, tgt_p)

    partials = out.reshape(h, nb, 8, 128)[:, :, 0, 0]             # (H, nB)
    return jnp.sum(partials, axis=1) / jnp.float32(b)             # (H,)


def abd_cross_entropy_forward(inputs, targets, *, num_classes=None, epsilon=0.1,
                              label_smooth=True):
    """Mirror of ABD_CrossEntropyLoss.forward.

    `inputs` is the tuple the module receives; forward uses inputs[1], which may
    be a single (B, K) logits array or a tuple of them.
    """
    del num_classes  # inferred from the logits
    preds = inputs[1]
    preds_tuple = tuple(preds) if isinstance(preds, (tuple, list)) else (preds,)

    shapes = {(p.shape, p.dtype) for p in preds_tuple}
    if len(shapes) == 1:
        # Fuse all heads into one pallas_call (single launch, parallel head axis).
        stack = jnp.stack(preds_tuple, axis=0)                    # (H, B, K)
        per_head = smoothed_cross_entropy_multi(
            stack, targets, epsilon=epsilon, label_smooth=label_smooth)
        return jnp.mean(per_head)

    # Mismatched head shapes: one call per head (still tiled/pipelined).
    losses = [smoothed_cross_entropy_multi(p[None], targets, epsilon=epsilon,
                                           label_smooth=label_smooth)[0]
              for p in preds_tuple]
    total = losses[0]
    for l in losses[1:]:
        total = total + l
    return total / len(losses)


def _reference_loss(logits, targets, epsilon, num_classes):
    """Plain-JAX reference of apply_loss for validation."""
    logits = logits.astype(jnp.float32)
    log_probs = jax.nn.log_softmax(logits, axis=1)
    onehot = jax.nn.one_hot(targets, num_classes, dtype=jnp.float32)
    smoothed = (1.0 - epsilon) * onehot + epsilon / num_classes
    return jnp.sum(jnp.mean(-smoothed * log_probs, axis=0))


if __name__ == "__main__":
    key = jax.random.PRNGKey(0)
    B, K = 8, 16                      # batch_size, num_classes (small demo shapes)
    epsilon = 0.1

    k1, k2, k3 = jax.random.split(key, 3)
    # ABD-Net style: inputs = (features, (logits_a, logits_b)); forward uses inputs[1].
    features = jax.random.normal(k1, (B, 32), dtype=jnp.float32)
    logits_a = jax.random.normal(k2, (B, K), dtype=jnp.float32)
    logits_b = jax.random.normal(k3, (B, K), dtype=jnp.float32)
    targets = jax.random.randint(jax.random.PRNGKey(1), (B,), 0, K, dtype=jnp.int32)

    inputs = (features, (logits_a, logits_b))

    loss = abd_cross_entropy_forward(inputs, targets, num_classes=K,
                                     epsilon=epsilon, label_smooth=True)
    loss = jax.block_until_ready(loss)

    ref = 0.5 * (_reference_loss(logits_a, targets, epsilon, K)
                 + _reference_loss(logits_b, targets, epsilon, K))
    assert jnp.allclose(loss, ref, rtol=1e-5, atol=1e-5), (loss, ref)

    # bf16 HBM path (halves DMA bytes); cast to f32 happens inside the kernel.
    inputs_bf16 = (features, (logits_a.astype(jnp.bfloat16),
                              logits_b.astype(jnp.bfloat16)))
    loss_bf16 = abd_cross_entropy_forward(inputs_bf16, targets, num_classes=K,
                                          epsilon=epsilon, label_smooth=True)
    loss_bf16 = jax.block_until_ready(loss_bf16)
    assert jnp.allclose(loss_bf16, ref, rtol=2e-2, atol=2e-2), (loss_bf16, ref)

    print("KERNEL_OK")
</pallas_src>

<mosaic_0001>
module attributes {stable_mosaic.version = 11 : i64} {
  func.func @_smoothed_ce_block_kernel(%arg0: i32, %arg1: i32, %arg2: memref<1x8x128xf32, #tpu.memory_space<vmem>>, %arg3: memref<8x1xi32, #tpu.memory_space<vmem>>, %arg4: memref<8x128xf32, #tpu.memory_space<vmem>>) attributes {dimension_semantics = [#tpu.dimension_semantics<parallel>, #tpu.dimension_semantics<parallel>], iteration_bounds = array<i64: 2, 1>, scalar_prefetch = 0 : i64, scratch_operands = 0 : i64, tpu.core_type = #tpu.core_type<tc>, window_params = [{transform_indices = @transform_0, window_bounds = array<i64: 1, 8, 128>}, {transform_indices = @transform_1, window_bounds = array<i64: 8, 1>}, {transform_indices = @transform_2, window_bounds = array<i64: 8, 128>}]} {
    %c0 = arith.constant 0 : index
    %c0_0 = arith.constant 0 : index
    %c0_1 = arith.constant 0 : index
    %0 = vector.load %arg2[%c0, %c0_0, %c0_1] : memref<1x8x128xf32, #tpu.memory_space<vmem>>, vector<1x8x128xf32>
    %1 = vector.shape_cast %0 : vector<1x8x128xf32> to vector<8x128xf32>
    %c0_2 = arith.constant 0 : index
    %c0_3 = arith.constant 0 : index
    %2 = vector.load %arg3[%c0_2, %c0_3] : memref<8x1xi32, #tpu.memory_space<vmem>>, vector<8x1xi32>
    %3 = tpu.iota {dimensions = array<i32: 1>} : vector<8x128xi32>
    %c16_i32 = arith.constant 16 : i32
    %4 = vector.broadcast %c16_i32 : i32 to vector<8x128xi32>
    %5 = arith.cmpi slt, %3, %4 : vector<8x128xi32>
    %cst = arith.constant 0xFF800000 : f32
    %6 = vector.broadcast %cst : f32 to vector<8x128xf32>
    %7 = arith.select %5, %1, %6 : vector<8x128xi1>, vector<8x128xf32>
    %cst_4 = arith.constant dense<0xFF800000> : vector<8xf32>
    %8 = vector.multi_reduction <maximumf>, %7, %cst_4 [1] : vector<8x128xf32> to vector<8xf32>
    %9 = vector.shape_cast %8 : vector<8xf32> to vector<8x1xf32>
    %10 = vector.broadcast %9 : vector<8x1xf32> to vector<8x128xf32>
    %11 = arith.subf %1, %10 : vector<8x128xf32>
    %12 = math.exp %11 : vector<8x128xf32>
    %cst_5 = arith.constant 0.000000e+00 : f32
    %13 = vector.broadcast %cst_5 : f32 to vector<8x128xf32>
    %14 = arith.select %5, %12, %13 : vector<8x128xi1>, vector<8x128xf32>
    %cst_6 = arith.constant dense<0.000000e+00> : vector<8xf32>
    %15 = vector.multi_reduction <add>, %14, %cst_6 [1] : vector<8x128xf32> to vector<8xf32>
    %16 = vector.shape_cast %15 : vector<8xf32> to vector<8x1xf32>
    %17 = math.log %16 : vector<8x1xf32>
    %cst_7 = arith.constant 0.000000e+00 : f32
    %18 = vector.broadcast %cst_7 : f32 to vector<8x128xf32>
    %19 = arith.select %5, %1, %18 : vector<8x128xi1>, vector<8x128xf32>
    %cst_8 = arith.constant dense<0.000000e+00> : vector<8xf32>
    %20 = vector.multi_reduction <add>, %19, %cst_8 [1] : vector<8x128xf32> to vector<8xf32>
    %21 = vector.shape_cast %20 : vector<8xf32> to vector<8x1xf32>
    %22 = vector.broadcast %2 : vector<8x1xi32> to vector<8x128xi32>
    %23 = arith.cmpi eq, %3, %22 : vector<8x128xi32>
    %cst_9 = arith.constant 0.000000e+00 : f32
    %24 = vector.broadcast %cst_9 : f32 to vector<8x128xf32>
    %25 = arith.select %23, %1, %24 : vector<8x128xi1>, vector<8x128xf32>
    %cst_10 = arith.constant dense<0.000000e+00> : vector<8xf32>
    %26 = vector.multi_reduction <add>, %25, %cst_10 [1] : vector<8x128xf32> to vector<8xf32>
    %27 = vector.shape_cast %26 : vector<8xf32> to vector<8x1xf32>
    %28 = arith.subf %27, %9 : vector<8x1xf32>
    %29 = arith.subf %28, %17 : vector<8x1xf32>
    %30 = arith.addf %9, %17 : vector<8x1xf32>
    %cst_11 = arith.constant 1.600000e+01 : f32
    %31 = vector.broadcast %cst_11 : f32 to vector<8x1xf32>
    %32 = arith.mulf %31, %30 : vector<8x1xf32>
    %33 = arith.subf %21, %32 : vector<8x1xf32>
    %cst_12 = arith.constant -0.899999976 : f32
    %34 = vector.broadcast %cst_12 : f32 to vector<8x1xf32>
    %35 = arith.mulf %34, %29 : vector<8x1xf32>
    %cst_13 = arith.constant 6.250000e-03 : f32
    %36 = vector.broadcast %cst_13 : f32 to vector<8x1xf32>
    %37 = arith.mulf %36, %33 : vector<8x1xf32>
    %38 = arith.subf %35, %37 : vector<8x1xf32>
    %39 = tpu.iota {dimensions = array<i32: 0>} : vector<8x1xi32>
    %c8_i32 = arith.constant 8 : i32
    %40 = arith.muli %arg1, %c8_i32 : i32
    %41 = vector.broadcast %40 : i32 to vector<8x1xi32>
    %42 = arith.addi %41, %39 : vector<8x1xi32>
    %c8_i32_14 = arith.constant 8 : i32
    %43 = vector.broadcast %c8_i32_14 : i32 to vector<8x1xi32>
    %44 = arith.cmpi slt, %42, %43 : vector<8x1xi32>
    %cst_15 = arith.constant 0.000000e+00 : f32
    %45 = vector.broadcast %cst_15 : f32 to vector<8x1xf32>
    %46 = arith.select %44, %38, %45 : vector<8x1xi1>, vector<8x1xf32>
    %47 = vector.shape_cast %46 : vector<8x1xf32> to vector<1x8x1xf32>
    %cst_16 = arith.constant dense<0.000000e+00> : vector<1xf32>
    %48 = vector.multi_reduction <add>, %47, %cst_16 [1, 2] : vector<1x8x1xf32> to vector<1xf32>
    %49 = vector.shape_cast %48 : vector<1xf32> to vector<1x1x1xf32>
    %50 = vector.extract %49[0, 0, 0] : f32 from vector<1x1x1xf32>
    %51 = vector.broadcast %50 : f32 to vector<8x128xf32>
    %c0_17 = arith.constant 0 : index
    %c0_18 = arith.constant 0 : index
    %52 = vector.load %arg4[%c0_17, %c0_18] : memref<8x128xf32, #tpu.memory_space<vmem>>, vector<8x128xf32>
    tpu.vector_store %arg4[%c0_17, %c0_18], %51 {strides = array<i32>} : memref<8x128xf32, #tpu.memory_space<vmem>>, vector<8x128xf32>,
    return
  }
  func.func @transform_0(%arg0: i32, %arg1: i32) -> (i32, i32, i32) {
    %c0_i32 = arith.constant 0 : i32
    %c0_i32_0 = arith.constant 0 : i32
    return %arg0, %arg1, %c0_i32 : i32, i32, i32
  }
  func.func @transform_1(%arg0: i32, %arg1: i32) -> (i32, i32) {
    %c0_i32 = arith.constant 0 : i32
    %c0_i32_0 = arith.constant 0 : i32
    return %arg1, %c0_i32 : i32, i32
  }
  func.func @transform_2(%arg0: i32, %arg1: i32) -> (i32, i32) {
    %c1_i32 = arith.constant 1 : i32
    %0 = arith.muli %arg0, %c1_i32 : i32
    %1 = arith.addi %0, %arg1 : i32
    %c0_i32 = arith.constant 0 : i32
    %c0_i32_0 = arith.constant 0 : i32
    return %1, %c0_i32 : i32, i32
  }
}

</mosaic_0001>

<bundles_post_ra>
// kernel: tpu_custom_call.1
= control target key start
LH: loop header
LB: loop body
LE: loop exit
PB: predicated region body
PF: predicated region fallthrough
CT: control target
= control target key end

     0   :  { %7 = vsyncpa [#allocation3], 0  ;;  %s720_s0 = inlined_call_operand.hbm [shape: f32[2,8,128], index: 0, kind: input, shape index: {}]   ;;  %s721_s1 = inlined_call_operand.vmem [shape: s32[8,1], index: 1, kind: input, shape index: {}]   ;;  %s722_s2 = inlined_call_operand.hbm [shape: f32[16,128], index: 2, kind: output, shape index: {}]  }
   0x1   :  { %9 = vsyncpa [#allocation3 + $0x1], 0 }
   0x2   :  { %10 = vsyncpa [#allocation4], 0 }
   0x3   :  { %12 = vsyncpa [#allocation4 + $0x1], 0  ;;  %s570_s9 = smov 0   ;;  %s572_s10 = smov 0  }
   0x4   :  { %s574_s11 = smov 0   ;;  %s576_s12 = smov 0  }
   0x5   :  { %s578_s13 = smov 0   ;;  %s580_s14 = smov 0  }
   0x6 LB: > { %s358_s15 = sadd.s32 4294967295, %s550_s14   ;;  %s359_s16 = sadd.s32 4294967294, %s550_s14   ;;  %s550_s14 = sphi %s580_s14, %s18_s14   ;;  %s546_s13 = sphi %s578_s13, %s734_s13   ;;  %s542_s12 = sphi %s576_s12, %s733_s12   ;;  %s538_s11 = sphi %s574_s11, %s732_s11   ;;  %s534_s10 = sphi %s572_s10, %s731_s10   ;;  %s530_s9 = sphi %s570_s9, %s730_s9  }
   0x7   : > { %s30_s17 = sadd.s32 1, %s546_s13  ;;  %s39_s18 = sadd.s32 1, %s538_s11 }
   0x8   : > { %p32_p0 = scmp.ge.s32.totalorder %s30_s17, 2  ;;  %p46_p1 = scmp.ne.s32.totalorder %s538_s11, %s534_s10 }
   0x9   : > { %p47_p2 = scmp.eq.s32.totalorder %s550_s14, 0  ;;  %p52_p3 = scmp.ne.s32.totalorder %s534_s10, %s530_s9 }
   0xa   : > { %s736_s17 = smov (%p32_p0, %s30_s17), 0  ;;  %p53_p5 = scmp.eq.s32.totalorder %s358_s15, 0 }
   0xb   : > { %p611_p4 = por %p47_p2, %p46_p1  ;;  %s34_s20 = ssub.s32 %s546_s13, %s736_s17 }
   0xc   : > { %p104_p6 = scmp.eq.s32.totalorder %s358_s15, 1  ;;  %p37_p7 = scmp.eq.s32.totalorder %s34_s20, 0 }
   0xd   : > { %p617_p8 = por %p53_p5, %p52_p3  ;;  %p110_p10 = scmp.eq.s32.totalorder %s359_s16, 1 }
   0xe   : > { %p621_p9 = por %p104_p6, %p46_p1  ;;  %p386_p13 = scmp.lt.s32.totalorder %s550_s14, 2 }
   0xf   : > { %s626_s23 = scalar_select %p37_p7, %s538_s11, %s39_s18  }
  0x10   : > { %p628_p11 = por %p110_p10, %p52_p3  ;;  %s137_s25 = sand.u32 1, %s538_s11  }
  0x11   : > { %s363_s26 = sshll.u32 %s137_s25, 3  ;;  %s364_s27 = sshll.u32 %s546_s13, 7 }
  0x12   : > { %s726_s24 = scalar_select %p628_p11, 1, 0 }
  0x13   : > { %s147_s30 = scalar_lea.hbm %s720_s0, %s364_s27  ;;  %s141_s3 = scalar_lea.vmem [#allocation2], %s363_s26 }
  0x14   : > { %s149_s4 = sshll.u32 %s141_s3, 4  ;;  %p641_p0 = pnand %p386_p13, %p611_p4  ;;  %s150_s4 = int_to_ptr.vmem [resolvable:$true] %s149_s4 }
  0x15   : > { %p365_p1 = scmp.ge.s32.totalorder %s550_s14, 1  ;;  %p154_p2 = scmp.lt.s32.totalorder %s550_s14, 3 }
  0x16   : > { %s138_s6 = scalar_lea.sflag [#allocation3], %s137_s25  ;;  %p444_p3 = pneg %p641_p0 }
  0x17   : > { %s455_s7 = scalar_lea.vmem %s150_s4, 128  ;;  %s552_s8 = smov [#allocation2]  }
  0x18   : > { %p456_p5 = scmp.ne.s32.totalorder %s150_s4, %s455_s7  ;;  %s460_s15 = sshll.u32 %s552_s8, 4  ;;  %s461_s15 = int_to_ptr.vmem [resolvable:$false] %s460_s15 }
  0x19   : > { %s462_s16 = scalar_lea.vmem %s461_s15, 256  ;;  %p463_p10 = scmp.lt.s32.totalorder %s150_s4, %s461_s15 }
  0x1a   : > { %p458_p6 = pnand %p456_p5, %p444_p3  ;;  %p464_p12 = scmp.lt.s32.totalorder %s462_s16, %s455_s7 }
  0x1c   : > { %p459_p7 = pneg %p458_p6  ;;  %p465_p4 = por %p464_p12, %p463_p10 }
  0x1e   : > { %p466_p13 = pnand %p465_p4, %p459_p7 }
  0x20   : > { %469 = shalt.err (!%p466_p13)
}
  0x21   : > { %381 = dma.hbm_to_vmem [thread:$0]  (!%p641_p0), %s147_s30, 128, %s150_s4, %s138_s6  }
  0x22   : > { %p155_p11 = pnand %p365_p1, %p154_p2 }
  0x23   : > { %s656_s18 = sand.u32 (!%p155_p11), 1, %s534_s10  }
  0x24   : > { %158 = sbr.rel (%p155_p11) target bundleno = 584 (0x248), region = 28  ;;  %s366_s19 = sshll.u32 (!%p155_p11), %s656_s18, 3 }
  0x25   : > { %s161_s20 = scalar_lea.sflag (!%p155_p11), [#allocation3], %s656_s18  ;;  %s164_s25 = scalar_lea.vmem (!%p155_p11), [#allocation2], %s366_s19 }
  0x29   : > { %521 = dma.done.wait (%p617_p8), %s161_s20, 128  }
  0x2a   : > { %523 = vsyncadd (%p617_p8), %s161_s20, 4294967168  ;;  %v196_v0 = vlaneseq  ;;  %v553_v1 = vmov 0   ;;  %v194_v3 = vld [vmem:[%s164_s25] sm:$0xff]  ;;  %vm235_vm2 = vcmask 7168   ;;  %s188_s21 = scalar_lea.vmem [#allocation5], %s366_s19  ;;  %s369_s29 = sshll.u32 %s542_s12, 7 }
  0x2b   : > { %437 = vset.pattern.permute.xlu0 %v553_v1  ;;  %v195_v5 = vld [vmem:[%s721_s1] sm:$0xff]  ;;  %s263_s28 = sshll.u32 %s188_s21, 4  ;;  %s261_s5 = scalar_lea.hbm %s722_s2, %s369_s29  ;;  %s675_s28 = int_to_ptr.vmem [resolvable:$true] %s263_s28 }
  0x2c   : > { %v197_v2 = vand.u32 127, %v196_v0  ;;  %s249_s6 = scalar_lea.sflag [#allocation4], %s656_s18  ;;  %s470_s7 = scalar_lea.vmem %s675_s28, 128 }
  0x2d   : > { %p471_p8 = scmp.ne.s32.totalorder %s675_s28, %s470_s7  ;;  %s554_s8 = smov [#allocation5]  }
  0x2e   : > { %vm198_vm0 = vcmp.lt.s32.totalorder %v197_v2, 16  ;;  %s474_s12 = sshll.u32 %s554_s8, 4  ;;  %s475_s12 = int_to_ptr.vmem [resolvable:$false] %s474_s12 }
  0x2f   : > { %v199_v4 = vsel %vm198_vm0, %v194_v3, -inf  ;;  %v210_v13 = vsel %vm198_vm0, %v194_v3, 0.0  ;;  %p472_p11 = pnand %p471_p8, %p621_p9  ;;  %s476_s15 = scalar_lea.vmem %s475_s12, 256 }
  0x30   : > { %200 = vmax.xlane.f32.xlu0 %v199_v4  ;;  %p477_p0 = scmp.lt.s32.totalorder %s675_s28, %s475_s12  ;;  %p478_p1 = scmp.lt.s32.totalorder %s476_s15, %s470_s7 }
  0x31   : > { %p473_p12 = pneg %p472_p11 }
  0x32   : > { %p479_p2 = por %p478_p1, %p477_p0 }
  0x34   : > { %p480_p3 = pnand %p479_p2, %p473_p12 }
  0x46   : > { %214 = vperm.xlu0 %437, %v195_v5  }
  0xb9   : > { %v201_v6 = vpop.xlane.xlu0 %200 }
  0xba   : > { %v202_v7 = vsub.f32 %v194_v3, %v201_v6 }
  0xbc   : > { %v203_v8 = vmul.f32 1.442695, %v202_v7 }
  0xbe   : > { %438 = vpow2.f32 %v203_v8 }
  0xc1   : > { %v215_v9 = vpop.permute.xlu0 %214 }
  0xc2   : > { %vm216_vm1 = vcmp.eq.s32.totalorder %v197_v2, %v215_v9 }
  0xc3   : > { %v217_v12 = vsel %vm216_vm1, %v194_v3, 0.0 }
  0xcb   : > { %v439_v10 = vpop.eup %438 }
  0xcc   : > { %v205_v11 = vsel %vm198_vm0, %v439_v10, 0.0 }
  0xcd   : > { %206 = vadd.xlane.f32.xlu1 %v205_v11 }
  0xd1   : > { %218 = vadd.xlane.f32.xlu1 %v217_v12 }
  0xd5   : > { %211 = vadd.xlane.f32.xlu1 %v210_v13 }
 0x156   : > { %v207_v14 = vpop.xlane.xlu1 %206 }
 0x157   : > { %440 = vlog2.f32 %v207_v14 }
 0x15a   : > { %v219_v16 = vpop.xlane.xlu1 %218 }
 0x15b   : > { %v220_v18 = vsub.f32 %v219_v16, %v201_v6 }
 0x15e   : > { %v212_v20 = vpop.xlane.xlu1 %211 }
 0x164   : > { %v441_v15 = vpop.eup %440 }
 0x165   : > { %v209_v17 = vmul.f32 0.6931472, %v441_v15 }
 0x167   : > { %v222_v19 = vadd.f32 %v209_v17, %v201_v6  ;;  %v221_v21 = vsub.f32 %v220_v18, %v209_v17 }
 0x169   : > { %v223_v22 = vmul.f32 16.0, %v222_v19  ;;  %v225_v24 = vmul.f32 -0.9, %v221_v21 }
 0x16b   : > { %v224_v23 = vsub.f32 %v212_v20, %v223_v22 }
 0x16d   : > { %v226_v25 = vmul.f32 0.00625, %v224_v23 }
 0x16f   : > { %v227_v26 = vsub.f32 %v225_v24, %v226_v25 }
 0x171   : > { %v236_v27 = vsel %vm235_vm2, %v227_v26, 0.0 }
 0x172   : > { %237 = vadd.xlane.f32.xlu1 %v236_v27 }
 0x1fb   : > { %v238_v28 = vpop.xlane.xlu1 %237 }
 0x1fc   : > { %v239_v29 = vrot.slane %v238_v28, 4 }
 0x1fe   : > { %v240_v30 = vadd.f32 %v239_v29, %v238_v28 }
 0x200   : > { %v241_v31 = vrot.slane %v240_v30, 2 }
 0x202   : > { %v242_v32 = vadd.f32 %v241_v31, %v240_v30 }
 0x204   : > { %v243_v33 = vrot.slane %v242_v32, 1 }
 0x206   : > { %v244_v34 = vadd.f32 %v243_v33, %v242_v32 }
 0x208   : > { %372 = vpush %v244_v34 }
 0x239   : > { %s373_s30 = spop %372 }
 0x23a   : > { %v246_v35 = vstv %s373_s30 }
 0x23b   : > { %247 = vst [vmem:[%s188_s21] sm:$0xff] %v246_v35 }
 0x23c   : > { %483 = shalt.err (!%p480_p3)
}
 0x23d   : > { %s484_s16 = scalar_lea.hbm %s261_s5, 128  ;;  %s488_s20 = scalar_lea.hbm %s722_s2, 256 }
 0x23e   : > { %p485_p5 = scmp.ne.s32.totalorder %s261_s5, %s484_s16  ;;  %p489_p10 = scmp.lt.s32.totalorder %s261_s5, %s722_s2 }
 0x23f   : > { %p490_p4 = scmp.lt.s32.totalorder %s488_s20, %s484_s16 }
 0x240   : > { %p486_p6 = pnand %p485_p5, %p621_p9 }
 0x241   : > { %p491_p13 = por %p490_p4, %p489_p10 }
 0x242   : > { %p487_p7 = pneg %p486_p6 }
 0x244   : > { %p492_p8 = pnand %p491_p13, %p487_p7 }
 0x246   : > { %495 = shalt.err (!%p492_p8)
}
 0x247   : > { %376 = dma.vmem_to_hbm [thread:$0]  (%p621_p9), %s675_s28, 128, %s261_s5, %s249_s6  }
 0x248 PF: > { %s275_s27 = sand.u32 1, %s530_s9   ;;  %p728_p11 = scmp.ne.s32.totalorder %s726_s24, 0 }
 0x249   : > { %p729_p12 = scmp.ge.s32.totalorder %s550_s14, 2  ;;  %s276_s21 = scalar_lea.sflag [#allocation4], %s275_s27 }
 0x24b   : > { %p383_p0 = pnand %p729_p12, %p728_p11 }
 0x24d   : > { %p384_p1 = pneg %p383_p0 }
 0x24f   : > { %525 = dma.done.wait (%p384_p1), %s276_s21, 128  }
 0x250   : > { %527 = vsyncadd (%p384_p1), %s276_s21, 4294967168  ;;  %s18_s14 = sadd.s32 1, %s550_s14   ;;  %s730_s9 = smov %s534_s10 }
 0x251   : > { %p15_p2 = scmp.ge.s32.totalorder %s18_s14, 4   ;;  %s731_s10 = smov %s538_s11 }
 0x252   : > { %s732_s11 = smov %s626_s23  ;;  %s733_s12 = smov %s546_s13 }
 0x253   : > { %s734_s13 = smov %s736_s17  ;;  %17 = sbr.rel (!%p15_p2) target bundleno = 6 (0x6), region = 76 }
 0x258   :  { %281 = vsyncpa [#allocation3], 1 }
 0x259   :  { %283 = vsyncpa [#allocation3 + $0x1], 1 }
 0x25a   :  { %284 = vsyncpa [#allocation4], 1 }
 0x25b   :  { %286 = vsyncpa [#allocation4 + $0x1], 1 }

</bundles_post_ra>
